<compile_context>
chip_gen: v7x
topology: tpu7x:2x2x1
jax: 0.10.0
libtpu: 0.0.40
codegen_flags: <defaults>
</compile_context>

<pallas_src>
import functools
import math

import jax
import jax.numpy as jnp
from jax.experimental import pallas as pl
from jax.experimental.pallas import tpu as pltpu


def _se_kernel(hw, mul_in_io_dtype, x_ref, w1t_ref, b1_ref, w2t_ref, b2_ref, o_ref):
    # x_ref/o_ref: (bblk, Cg, HW)   w1t_ref: (Sg, Cg)   b1_ref: (1, Sg)
    # w2t_ref: (Cg, Sg)             b2_ref: (1, Cg)
    inv_hw = 1.0 / hw

    # AdaptiveAvgPool2d(1): per-row mean over the spatial (lane) axis.
    # The f32 upcast fuses into the reduction; no full f32 copy of the block is kept live.
    pooled = jnp.sum(x_ref[...].astype(jnp.float32), axis=-1) * inv_hw          # (bblk, Cg)

    # FC1 (C -> S) on the VPU: broadcast-multiply + lane reduction against the transposed weight.
    h = jnp.sum(pooled[:, None, :] * w1t_ref[...][None, :, :], axis=-1) + b1_ref[...]  # (bblk, Sg)
    h = h * jax.nn.sigmoid(h)                                                    # Swish

    # FC2 (S -> C) on the VPU.
    z = jnp.sum(h[:, None, :] * w2t_ref[...][None, :, :], axis=-1) + b2_ref[...]       # (bblk, Cg)
    gate = jax.nn.sigmoid(z)                                                     # (bblk, Cg), f32

    # x * sigmoid(se(x)): re-read the block instead of holding an upcast copy across the FC math.
    x_in = x_ref[...]
    if mul_in_io_dtype:
        # bf16 VALU path (v6e/v7x): halves vregs/VALU ops in the only heavy elementwise pass.
        o_ref[...] = (x_in * gate.astype(x_in.dtype)[:, :, None]).astype(o_ref.dtype)
    else:
        # v5e (no bf16 VALU) and f32 transport: fuse the upcast into the store expression.
        o_ref[...] = (x_in.astype(jnp.float32) * gate[:, :, None]).astype(o_ref.dtype)


def _orthogonalize(w):
    # Mirrors myMatmul's SVD step: W -> U @ Vh, with column normalization when out > in.
    u, s, vh = jnp.linalg.svd(w, full_matrices=False)
    m = u @ vh
    if w.shape[1] > w.shape[0]:
        m = m / (jnp.linalg.norm(m, axis=0, keepdims=True) + 1e-10)
    return m


def prepare_params(w1, b1, w2, b2):
    """One-time parameter prep (SVD orthogonalization + transpose), outside the call path."""
    w1o = _orthogonalize(w1)          # (C, S)
    w2o = _orthogonalize(w2)          # (S, C)
    return (jnp.asarray(w1o.T),       # (S, C)
            jnp.asarray(b1),          # (1, S)
            jnp.asarray(w2o.T),       # (C, S)
            jnp.asarray(b2))          # (1, C)


def _round_up(n, m):
    return ((n + m - 1) // m) * m


def _device_tuning():
    """Per-generation knobs; safe defaults if the device kind can't be queried."""
    kind = ""
    try:
        kind = jax.devices()[0].device_kind.lower()
    except Exception:
        pass
    is_v7 = "v7" in kind
    has_bf16_valu = ("v6" in kind) or is_v7
    if is_v7:
        # 64 MiB VMEM, 2 TensorCores, 3.2 TB/s HBM: moderate blocks, keep headroom, split grid.
        return dict(block_target=7 << 20, vmem_cap=48 << 20, split_for_cores=2,
                    bf16_mul=has_bf16_valu)
    # v5e / v6e: 128 MiB VMEM, single TensorCore -> bigger blocks, no forced grid split.
    return dict(block_target=12 << 20, vmem_cap=96 << 20, split_for_cores=1,
                bf16_mul=has_bf16_valu)


def se_module(x, w1t, b1, w2t, b2):
    """x: (B, C, H, W); w1t: (S, C); b1: (1, S); w2t: (C, S); b2: (1, C).  Returns x.dtype."""
    B, C, H, W = x.shape
    HW = H * W
    S = w1t.shape[0]
    itemsize = jnp.dtype(x.dtype).itemsize
    sublanes = 8 * max(1, 4 // itemsize)          # sublane packing: 8 for f32, 16 for bf16

    tune = _device_tuning()

    # Fold g batch elements into the channel (sublane) axis when C alone under-fills the packed
    # sublane tile.  The reshape of a contiguous array is metadata-only (no extra HBM pass).
    g = 1
    if C % sublanes != 0:
        g_want = sublanes // math.gcd(C, sublanes)
        if g_want > 1 and B % g_want == 0:
            g = g_want
    Cg, Sg = g * C, g * S
    Bf = B // g

    x_flat = x.reshape(Bf, Cg, HW)                # contiguous merge: no data movement

    # Block-diagonal (g copies) weights so the folded sub-batches never mix; tiny, per-call.
    if g > 1:
        eye = jnp.eye(g, dtype=w1t.dtype)
        w1t_k = jnp.kron(eye, w1t)                # (Sg, Cg)
        w2t_k = jnp.kron(eye, w2t)                # (Cg, Sg)
        b1_k = jnp.tile(b1, (1, g))               # (1, Sg)
        b2_k = jnp.tile(b2, (1, g))               # (1, Cg)
    else:
        w1t_k, w2t_k, b1_k, b2_k = w1t, w2t, b1, b2

    # VMEM footprint per folded row, including sublane/lane padding and the f32 temporaries.
    lane_foot = _round_up(HW, 128)
    sub_foot = _round_up(Cg, sublanes)
    row_io = sub_foot * lane_foot * itemsize                 # one x/o row in one buffer
    row_f32 = _round_up(Cg, 8) * lane_foot * 4               # transient f32 upcast of one row
    per_row = 4 * row_io + row_f32                           # in+out double-buffered + f32 temp
    aux = (w1t_k.size + b1_k.size + w2t_k.size + b2_k.size) * 4 + (4 << 20)

    bblk = max(1, min(Bf,
                      max(1, tune["block_target"] // max(row_io, 1)),
                      max(1, (tune["vmem_cap"] - aux) // max(per_row, 1))))
    if tune["split_for_cores"] > 1 and Bf >= tune["split_for_cores"]:
        # v7x megacore: keep >= 2 "parallel" grid steps so both TensorCores get work.
        bblk = min(bblk, pl.cdiv(Bf, tune["split_for_cores"]))
    grid_b = pl.cdiv(Bf, bblk)                    # last block may be partial: no batch padding

    vmem_limit = int(min(max(per_row * bblk + aux, 32 << 20), tune["vmem_cap"]))
    # TODO(synk): shapes where a single (1, Cg, HW) row exceeds the VMEM budget (very large
    # C*H*W, mainly on v7x's 64 MiB) need a two-pass spatial-tiled variant (pass 1 accumulates
    # the pooled sum into scratch, pass 2 applies the gate per spatial tile).

    mul_in_io_dtype = bool(tune["bf16_mul"]) and x.dtype == jnp.bfloat16
    kernel = functools.partial(_se_kernel, HW, mul_in_io_dtype)

    cost = pl.CostEstimate(
        flops=int(3 * B * C * HW + 4 * B * C * S),
        transcendentals=int(B * (S + C)),
        bytes_accessed=int(2 * B * C * HW * itemsize),
    )

    out = pl.pallas_call(
        kernel,
        out_shape=jax.ShapeDtypeStruct((Bf, Cg, HW), x.dtype),
        grid_spec=pltpu.PrefetchScalarGridSpec(
            num_scalar_prefetch=0,
            grid=(grid_b,),
            in_specs=[
                # If a profile shows exposed DMA gaps at step boundaries, add
                # pipeline_mode=pl.Buffered(3) here; default depth-2 is kept otherwise.
                pl.BlockSpec((bblk, Cg, HW), lambda i: (i, 0, 0)),
                pl.BlockSpec((Sg, Cg), lambda i: (0, 0)),   # constant index -> VMEM-resident
                pl.BlockSpec((1, Sg), lambda i: (0, 0)),
                pl.BlockSpec((Cg, Sg), lambda i: (0, 0)),
                pl.BlockSpec((1, Cg), lambda i: (0, 0)),
            ],
            out_specs=pl.BlockSpec((bblk, Cg, HW), lambda i: (i, 0, 0)),
        ),
        compiler_params=pltpu.CompilerParams(
            dimension_semantics=("parallel",),
            vmem_limit_bytes=vmem_limit,
        ),
        cost_estimate=cost,
    )(x_flat, w1t_k, b1_k, w2t_k, b2_k)

    return out.reshape(B, C, H, W)


def _ref_se_module(x, w1, b1, w2, b2):
    # Pure-JAX reference (matches PyTorch SEModule forward semantics).
    w1o = _orthogonalize(w1)
    w2o = _orthogonalize(w2)
    pooled = x.mean(axis=(2, 3))                 # (B, C)
    h = pooled @ w1o + b1                        # (B, S)
    h = h * jax.nn.sigmoid(h)
    z = h @ w2o + b2                             # (B, C)
    gate = jax.nn.sigmoid(z)
    return x * gate[:, :, None, None]


def _kaiming_uniform(key, shape):
    # PyTorch kaiming_uniform_ (nonlinearity='relu') on a 2-D (in, out) weight:
    # fan_in = shape[1], gain = sqrt(2), bound = gain * sqrt(3 / fan_in)
    fan_in = shape[1]
    bound = math.sqrt(2.0) * math.sqrt(3.0 / fan_in)
    return jax.random.uniform(key, shape, jnp.float32, minval=-bound, maxval=bound)


if __name__ == "__main__":
    B, C, H, W = 2, 8, 16, 16    # in_ = 8
    S = 4                        # squeeze_ch = 4

    key = jax.random.PRNGKey(0)
    kx, kw1, kw2 = jax.random.split(key, 3)

    x = jax.random.normal(kx, (B, C, H, W), jnp.float32)
    w1 = _kaiming_uniform(kw1, (C, S))      # myPointwiseConv(in_, squeeze).weight
    b1 = jnp.zeros((1, S), jnp.float32)     # bias (squeeze, 1, 1) -> stored as (1, S)
    w2 = _kaiming_uniform(kw2, (S, C))      # myPointwiseConv(squeeze, in_).weight
    b2 = jnp.zeros((1, C), jnp.float32)     # bias (in_, 1, 1) -> stored as (1, C)

    # SVD orthogonalization is done ONCE, outside the jitted per-call path.
    params = prepare_params(w1, b1, w2, b2)
    se_fn = jax.jit(se_module)

    # f32 path (matches the PyTorch module's forward numerics).
    out = jax.block_until_ready(se_fn(x, *params))
    ref = _ref_se_module(x, w1, b1, w2, b2)
    assert out.shape == (B, C, H, W)
    assert jnp.allclose(out, ref, atol=1e-5, rtol=1e-5)

    # bf16 transport path (halves HBM traffic; exercises the batch->sublane folding and, on
    # v6e/v7x, the bf16 output-multiply path; pooling/FC stay f32 inside the kernel).
    x_bf16 = x.astype(jnp.bfloat16)
    out_bf16 = jax.block_until_ready(se_fn(x_bf16, *params))
    ref_bf16 = _ref_se_module(x_bf16.astype(jnp.float32), w1, b1, w2, b2)
    assert out_bf16.dtype == jnp.bfloat16
    assert jnp.allclose(out_bf16.astype(jnp.float32), ref_bf16, atol=5e-2, rtol=5e-2)

    print("KERNEL_OK")
</pallas_src>

<mosaic_0001>
module attributes {stable_mosaic.version = 11 : i64} {
  func.func @_se_kernel(%arg0: i32, %arg1: memref<2x8x256xf32, #tpu.memory_space<vmem>>, %arg2: memref<4x8xf32, #tpu.memory_space<vmem>>, %arg3: memref<1x4xf32, #tpu.memory_space<vmem>>, %arg4: memref<8x4xf32, #tpu.memory_space<vmem>>, %arg5: memref<1x8xf32, #tpu.memory_space<vmem>>, %arg6: memref<2x8x256xf32, #tpu.memory_space<vmem>>) attributes {dimension_semantics = [#tpu.dimension_semantics<parallel>], iteration_bounds = array<i64: 1>, scalar_prefetch = 0 : i64, scratch_operands = 0 : i64, tpu.core_type = #tpu.core_type<tc>, window_params = [{transform_indices = @transform_0, window_bounds = array<i64: 2, 8, 256>}, {pipeline_mode = #tpu.pipeline_mode<synchronous>, transform_indices = @transform_1, window_bounds = array<i64: 4, 8>}, {pipeline_mode = #tpu.pipeline_mode<synchronous>, transform_indices = @transform_2, window_bounds = array<i64: 1, 4>}, {pipeline_mode = #tpu.pipeline_mode<synchronous>, transform_indices = @transform_3, window_bounds = array<i64: 8, 4>}, {pipeline_mode = #tpu.pipeline_mode<synchronous>, transform_indices = @transform_4, window_bounds = array<i64: 1, 8>}, {transform_indices = @transform_5, window_bounds = array<i64: 2, 8, 256>}]} {
    %c0 = arith.constant 0 : index
    %c0_0 = arith.constant 0 : index
    %c0_1 = arith.constant 0 : index
    %0 = vector.load %arg1[%c0, %c0_0, %c0_1] : memref<2x8x256xf32, #tpu.memory_space<vmem>>, vector<2x8x256xf32>
    %cst = arith.constant dense<0.000000e+00> : vector<2x8xf32>
    %1 = vector.multi_reduction <add>, %0, %cst [2] : vector<2x8x256xf32> to vector<2x8xf32>
    %cst_2 = arith.constant 3.906250e-03 : f32
    %2 = vector.broadcast %cst_2 : f32 to vector<2x8xf32>
    %3 = arith.mulf %1, %2 : vector<2x8xf32>
    %4 = vector.shape_cast %3 : vector<2x8xf32> to vector<2x1x8xf32>
    %c0_3 = arith.constant 0 : index
    %c0_4 = arith.constant 0 : index
    %5 = vector.load %arg2[%c0_3, %c0_4] : memref<4x8xf32, #tpu.memory_space<vmem>>, vector<4x8xf32>
    %6 = vector.shape_cast %5 : vector<4x8xf32> to vector<1x4x8xf32>
    %7 = vector.broadcast %4 : vector<2x1x8xf32> to vector<2x4x8xf32>
    %8 = vector.broadcast %6 : vector<1x4x8xf32> to vector<2x4x8xf32>
    %9 = arith.mulf %7, %8 : vector<2x4x8xf32>
    %cst_5 = arith.constant dense<0.000000e+00> : vector<2x4xf32>
    %10 = vector.multi_reduction <add>, %9, %cst_5 [2] : vector<2x4x8xf32> to vector<2x4xf32>
    %c0_6 = arith.constant 0 : index
    %c0_7 = arith.constant 0 : index
    %11 = vector.load %arg3[%c0_6, %c0_7] : memref<1x4xf32, #tpu.memory_space<vmem>>, vector<1x4xf32>
    %12 = vector.broadcast %11 : vector<1x4xf32> to vector<2x4xf32>
    %13 = arith.addf %10, %12 : vector<2x4xf32>
    %14 = arith.negf %13 : vector<2x4xf32>
    %15 = math.exp %14 : vector<2x4xf32>
    %cst_8 = arith.constant 1.000000e+00 : f32
    %16 = vector.broadcast %cst_8 : f32 to vector<2x4xf32>
    %17 = arith.addf %16, %15 : vector<2x4xf32>
    %18 = arith.divf %16, %17 : vector<2x4xf32>
    %19 = arith.mulf %13, %18 : vector<2x4xf32>
    %20 = vector.shape_cast %19 : vector<2x4xf32> to vector<2x1x4xf32>
    %c0_9 = arith.constant 0 : index
    %c0_10 = arith.constant 0 : index
    %21 = vector.load %arg4[%c0_9, %c0_10] : memref<8x4xf32, #tpu.memory_space<vmem>>, vector<8x4xf32>
    %22 = vector.shape_cast %21 : vector<8x4xf32> to vector<1x8x4xf32>
    %23 = vector.broadcast %20 : vector<2x1x4xf32> to vector<2x8x4xf32>
    %24 = vector.broadcast %22 : vector<1x8x4xf32> to vector<2x8x4xf32>
    %25 = arith.mulf %23, %24 : vector<2x8x4xf32>
    %cst_11 = arith.constant dense<0.000000e+00> : vector<2x8xf32>
    %26 = vector.multi_reduction <add>, %25, %cst_11 [2] : vector<2x8x4xf32> to vector<2x8xf32>
    %c0_12 = arith.constant 0 : index
    %c0_13 = arith.constant 0 : index
    %27 = vector.load %arg5[%c0_12, %c0_13] : memref<1x8xf32, #tpu.memory_space<vmem>>, vector<1x8xf32>
    %28 = vector.broadcast %27 : vector<1x8xf32> to vector<2x8xf32>
    %29 = arith.addf %26, %28 : vector<2x8xf32>
    %30 = arith.negf %29 : vector<2x8xf32>
    %31 = math.exp %30 : vector<2x8xf32>
    %cst_14 = arith.constant 1.000000e+00 : f32
    %32 = vector.broadcast %cst_14 : f32 to vector<2x8xf32>
    %33 = arith.addf %32, %31 : vector<2x8xf32>
    %34 = arith.divf %32, %33 : vector<2x8xf32>
    %c0_15 = arith.constant 0 : index
    %c0_16 = arith.constant 0 : index
    %c0_17 = arith.constant 0 : index
    %35 = vector.load %arg1[%c0_15, %c0_16, %c0_17] : memref<2x8x256xf32, #tpu.memory_space<vmem>>, vector<2x8x256xf32>
    %36 = vector.shape_cast %34 : vector<2x8xf32> to vector<2x8x1xf32>
    %37 = vector.broadcast %36 : vector<2x8x1xf32> to vector<2x8x256xf32>
    %38 = arith.mulf %35, %37 : vector<2x8x256xf32>
    %c0_18 = arith.constant 0 : index
    %c0_19 = arith.constant 0 : index
    %c0_20 = arith.constant 0 : index
    %39 = vector.load %arg6[%c0_18, %c0_19, %c0_20] : memref<2x8x256xf32, #tpu.memory_space<vmem>>, vector<2x8x256xf32>
    tpu.vector_store %arg6[%c0_18, %c0_19, %c0_20], %38 {strides = array<i32>} : memref<2x8x256xf32, #tpu.memory_space<vmem>>, vector<2x8x256xf32>,
    return
  }
  func.func @transform_0(%arg0: i32) -> (i32, i32, i32) {
    %c0_i32 = arith.constant 0 : i32
    %c0_i32_0 = arith.constant 0 : i32
    %c0_i32_1 = arith.constant 0 : i32
    return %arg0, %c0_i32, %c0_i32_0 : i32, i32, i32
  }
  func.func @transform_1(%arg0: i32) -> (i32, i32) {
    %c0_i32 = arith.constant 0 : i32
    %c0_i32_0 = arith.constant 0 : i32
    %c0_i32_1 = arith.constant 0 : i32
    return %c0_i32, %c0_i32_0 : i32, i32
  }
  func.func @transform_2(%arg0: i32) -> (i32, i32) {
    %c0_i32 = arith.constant 0 : i32
    %c0_i32_0 = arith.constant 0 : i32
    %c0_i32_1 = arith.constant 0 : i32
    return %c0_i32, %c0_i32_0 : i32, i32
  }
  func.func @transform_3(%arg0: i32) -> (i32, i32) {
    %c0_i32 = arith.constant 0 : i32
    %c0_i32_0 = arith.constant 0 : i32
    %c0_i32_1 = arith.constant 0 : i32
    return %c0_i32, %c0_i32_0 : i32, i32
  }
  func.func @transform_4(%arg0: i32) -> (i32, i32) {
    %c0_i32 = arith.constant 0 : i32
    %c0_i32_0 = arith.constant 0 : i32
    %c0_i32_1 = arith.constant 0 : i32
    return %c0_i32, %c0_i32_0 : i32, i32
  }
  func.func @transform_5(%arg0: i32) -> (i32, i32, i32) {
    %c0_i32 = arith.constant 0 : i32
    %c0_i32_0 = arith.constant 0 : i32
    %c0_i32_1 = arith.constant 0 : i32
    return %arg0, %c0_i32, %c0_i32_0 : i32, i32, i32
  }
}

</mosaic_0001>

<bundles_post_ra>
// kernel: se_module.1
= control target key start
LH: loop header
LB: loop body
LE: loop exit
PB: predicated region body
PF: predicated region fallthrough
CT: control target
= control target key end

     0   :  { %v34_v0 = vlaneseq  ;;  %v492_v15 = vmov 0   ;;  %vm140_vm0 = vcmask 1041409   ;;  %vm142_vm1 = vcmask 1042434   ;;  %s644_s0 = inlined_call_operand.vmem [shape: f32[2,8,256], index: 0, kind: input, shape index: {}]   ;;  %s645_s1 = inlined_call_operand.vmem [shape: f32[4,8], index: 1, kind: input, shape index: {}]   ;;  %s646_s3 = inlined_call_operand.vmem [shape: f32[8,4], index: 3, kind: input, shape index: {}]   ;;  %s647_s2 = inlined_call_operand.vmem [shape: f32[1,4], index: 2, kind: input, shape index: {}]   ;;  %s648_s4 = inlined_call_operand.vmem [shape: f32[1,8], index: 4, kind: input, shape index: {}]   ;;  %s649_s5 = inlined_call_operand.vmem [shape: f32[2,8,256], index: 5, kind: output, shape index: {}]  }
   0x1   :  { %v526_v1 = vld [vmem:[%s644_s0] sm:$0xff]  ;;  %v531_v2 = vld [vmem:[%s644_s0 + $0x8] sm:$0xff]  ;;  %v536_v3 = vld [vmem:[%s644_s0 + $0x10] sm:$0xff]  ;;  %474 = vset.pattern.permute.xlu1 %v492_v15  ;;  %475 = vset.pattern.permute.xlu0 %v492_v15  ;;  %vm144_vm2 = vcmask 1043459   ;;  %vm151_vm3 = vcmask 60416   ;;  %vm397_vm4 = vcmask 1044484  }
   0x2   :  { %v24_v4 = vadd.f32 %v531_v2, %v526_v1  ;;  %v543_v5 = vld [vmem:[%s644_s0 + $0x18] sm:$0xff]  ;;  %v545_v6 = vshrl.u32 %v34_v0, 7  ;;  %v32_v7 = vld [vmem:[%s645_s1] sm:$0xf]  ;;  %v107_v37 = vand.u32 127, %v34_v0  ;;  %vm399_vm5 = vcmask 1045509  }
   0x3   :  { %v27_v8 = vadd.f32 %v543_v5, %v536_v3  ;;  %v184_v60 = vld [vmem:[%s646_s3] sm:$0xff]  ;;  %vm401_vm6 = vcmask 1046534   ;;  %vm403_vm7 = vcmask 1047559   ;;  %vm414_vm8 = vcmask 31744  }
   0x4   :  { %25 = vadd.xlane.f32.xlu0 %v24_v4  ;;  %v36_v9 = vsub.s32 0, %v545_v6  ;;  %v43_v10 = vsub.s32 1, %v545_v6  ;;  %v57_v13 = vsub.s32 3, %v545_v6  ;;  %v50_v16 = vsub.s32 2, %v545_v6  ;;  %v467_v62 = vld [vmem:[%s647_s2] ss:$0 sm:$0xff] }
   0x5   :  { %v565_v39 = vsub.s32 %v107_v37, %v545_v6  ;;  %v216_v0 = vsub.s32 4, %v545_v6  ;;  %v237_v15 = vsub.s32 7, %v545_v6 }
   0x6   :  { %v37_v11 = vrot.slane %v32_v7, %v36_v9  ;;  %v44_v12 = vrot.slane %v32_v7, %v43_v10  ;;  %v58_v14 = vrot.slane %v32_v7, %v57_v13  ;;  %v51_v17 = vrot.slane %v32_v7, %v50_v16 }
   0x7   :  { %v189_v61 = vrot.slane %v184_v60, %v36_v9  ;;  %v203_v63 = vrot.slane %v184_v60, %v50_v16  ;;  %v196_v4 = vrot.slane %v184_v60, %v43_v10  ;;  %v217_v7 = vrot.slane %v184_v60, %v216_v0 }
   0x8   :  { %28 = vadd.xlane.f32.xlu0 %v27_v8  ;;  %39 = vbcast.lane.b32.xlu1 %v37_v11, 256  ;;  %v230_v8 = vsub.s32 6, %v545_v6  ;;  %v210_v9 = vrot.slane %v184_v60, %v57_v13  ;;  %v223_v11 = vsub.s32 5, %v545_v6  ;;  %v238_v16 = vrot.slane %v184_v60, %v237_v15 }
   0xc   :  { %46 = vbcast.lane.b32.xlu1 %v44_v12, 256  ;;  %v231_v12 = vrot.slane %v184_v60, %v230_v8 }
  0x10   :  { %60 = vbcast.lane.b32.xlu1 %v58_v14, 256  ;;  %v224_v14 = vrot.slane %v184_v60, %v223_v11 }
  0x1e   :  { %53 = vbcast.lane.b32.xlu0 %v51_v17, 256 }
  0x7a   :  { %v40_v18 = vpop.permute.xlu1 %39 }
  0x7e   :  { %v47_v23 = vpop.permute.xlu1 %46 }
  0x82   :  { %v61_v31 = vpop.permute.xlu1 %60 }
  0x91   :  { %v26_v19 = vpop.xlane.xlu0 %25 }
  0x92   :  { %v30_v20 = vmul.f32 0.00390625, %v26_v19 }
  0x94   :  { %v66_v21 = vmul.f32 %v40_v18, %v30_v20  ;;  %v67_v25 = vmul.f32 %v47_v23, %v30_v20  ;;  %v69_v32 = vmul.f32 %v61_v31, %v30_v20 }
  0x95   :  { %v29_v22 = vpop.xlane.xlu0 %28 }
  0x96   :  { %83 = vperm.xlu1 %474, %v66_v21   ;;  %v31_v24 = vmul.f32 0.00390625, %v29_v22 }
  0x98   :  { %v70_v28 = vmul.f32 %v40_v18, %v31_v24  ;;  %v71_v29 = vmul.f32 %v47_v23, %v31_v24  ;;  %v73_v33 = vmul.f32 %v61_v31, %v31_v24 }
  0x99   :  { %v54_v26 = vpop.permute.xlu0 %53 }
  0x9a   :  { %v72_v27 = vmul.f32 %v54_v26, %v31_v24  ;;  %86 = vperm.xlu1 %474, %v67_v25   ;;  %v68_v30 = vmul.f32 %v54_v26, %v30_v20 }
  0x9c   :  { %101 = vperm.xlu0 %475, %v72_v27  }
  0x9e   :  { %95 = vperm.xlu1 %474, %v70_v28  }
  0xa2   :  { %98 = vperm.xlu1 %474, %v71_v29  }
  0xa6   :  { %89 = vperm.xlu1 %474, %v68_v30  }
  0xaa   :  { %92 = vperm.xlu1 %474, %v69_v32  }
  0xae   :  { %104 = vperm.xlu1 %474, %v73_v33  }
 0x115   :  { %v84_v34 = vpop.permute.xlu1 %83 }
 0x116   :  { %v111_v43 = vrot.slane %v84_v34, %v565_v39 }
 0x119   :  { %v87_v35 = vpop.permute.xlu1 %86 }
 0x11a   :  { %v115_v41 = vrot.slane %v87_v35, %v565_v39 }
 0x11b   :  { %v102_v48 = vpop.permute.xlu0 %101 }
 0x11c   :  { %v141_v46 = vsel %vm140_vm0, %v115_v41, %v111_v43  ;;  %v135_v53 = vrot.slane %v102_v48, %v565_v39 }
 0x11d   :  { %v96_v36 = vpop.permute.xlu1 %95 }
 0x11e   :  { %v127_v47 = vrot.slane %v96_v36, %v565_v39 }
 0x121   :  { %v99_v38 = vpop.permute.xlu1 %98 }
 0x122   :  { %v131_v44 = vrot.slane %v99_v38, %v565_v39 }
 0x124   :  { %v146_v51 = vsel %vm140_vm0, %v131_v44, %v127_v47 }
 0x125   :  { %v90_v40 = vpop.permute.xlu1 %89  ;;  %v147_v57 = vsel %vm142_vm1, %v135_v53, %v146_v51 }
 0x126   :  { %v119_v42 = vrot.slane %v90_v40, %v565_v39 }
 0x128   :  { %v143_v50 = vsel %vm142_vm1, %v119_v42, %v141_v46 }
 0x129   :  { %v93_v45 = vpop.permute.xlu1 %92 }
 0x12a   :  { %v123_v49 = vrot.slane %v93_v45, %v565_v39 }
 0x12c   :  { %v145_v52 = vsel %vm144_vm2, %v123_v49, %v143_v50 }
 0x12d   :  { %v105_v54 = vpop.permute.xlu1 %104  ;;  %v152_v55 = vsel %vm151_vm3, %v145_v52, 0.0 }
 0x12e   :  { %v139_v56 = vrot.slane %v105_v54, %v565_v39  ;;  %153 = vadd.xlane.f32.xlu0 %v152_v55 }
 0x130   :  { %v148_v58 = vsel %vm144_vm2, %v139_v56, %v147_v57 }
 0x131   :  { %v155_v59 = vsel %vm151_vm3, %v148_v58, 0.0 }
 0x132   :  { %156 = vadd.xlane.f32.xlu1 %v155_v59 }
 0x143   :  { %191 = vbcast.lane.b32.xlu1 %v189_v61, 256 }
 0x144   :  { %165 = vbcast.lane.b32.xlu0 %v467_v62, 256 }
 0x147   :  { %205 = vbcast.lane.b32.xlu1 %v203_v63, 256 }
 0x148   :  { %198 = vbcast.lane.b32.xlu0 %v196_v4, 256 }
 0x14b   :  { %219 = vbcast.lane.b32.xlu1 %v217_v7, 256 }
 0x14c   :  { %212 = vbcast.lane.b32.xlu0 %v210_v9, 256 }
 0x14f   :  { %233 = vbcast.lane.b32.xlu1 %v231_v12, 256 }
 0x150   :  { %226 = vbcast.lane.b32.xlu0 %v224_v14, 256 }
 0x154   :  { %240 = vbcast.lane.b32.xlu0 %v238_v16, 256 }
 0x1bb   :  { %v154_v10 = vpop.xlane.xlu0 %153 }
 0x1bf   :  { %v166_v17 = vpop.permute.xlu0 %165  ;;  %v157_v18 = vpop.xlane.xlu1 %156 }
 0x1c0   :  { %v168_v19 = vadd.f32 %v166_v17, %v154_v10  ;;  %v169_v20 = vadd.f32 %v166_v17, %v157_v18 }
 0x1c2   :  { %v468_v21 = vmul.f32 -1.442695, %v168_v19  ;;  %v469_v22 = vmul.f32 -1.442695, %v169_v20 }
 0x1c3   :  { %v199_v28 = vpop.permute.xlu0 %198  ;;  %v192_v29 = vpop.permute.xlu1 %191 }
 0x1c4   :  { %476 = vpow2.f32 %v468_v21 }
 0x1c5   :  { %478 = vpow2.f32 %v469_v22 }
 0x1c7   :  { %v206_v35 = vpop.permute.xlu1 %205  ;;  %v213_v38 = vpop.permute.xlu0 %212 }
 0x1cb   :  { %v220_v42 = vpop.permute.xlu1 %219  ;;  %v227_v45 = vpop.permute.xlu0 %226 }
 0x1ce   :  { %v477_v13 = vpop.eup %476 }
 0x1cf   :  { %v479_v23 = vpop.eup %478  ;;  %v176_v24 = vadd.f32 1.0, %v477_v13  ;;  %v234_v48 = vpop.permute.xlu1 %233 }
 0x1d0   :  { %v177_v25 = vadd.f32 1.0, %v479_v23  ;;  %v241_v50 = vpop.permute.xlu0 %240 }
 0x1d1   :  { %480 = vrcp.f32 %v176_v24 }
 0x1d2   :  { %482 = vrcp.f32 %v177_v25 }
 0x1db   :  { %v481_v6 = vpop.eup %480 }
 0x1dc   :  { %v483_v26 = vpop.eup %482  ;;  %v182_v27 = vmul.f32 %v481_v6, %v168_v19 }
 0x1dd   :  { %v183_v30 = vmul.f32 %v483_v26, %v169_v20 }
 0x1de   :  { %v251_v31 = vmul.f32 %v199_v28, %v182_v27  ;;  %v250_v32 = vmul.f32 %v192_v29, %v182_v27  ;;  %v252_v37 = vmul.f32 %v206_v35, %v182_v27  ;;  %v253_v41 = vmul.f32 %v213_v38, %v182_v27 }
 0x1df   :  { %v259_v33 = vmul.f32 %v199_v28, %v183_v30  ;;  %v258_v34 = vmul.f32 %v192_v29, %v183_v30  ;;  %v260_v36 = vmul.f32 %v206_v35, %v183_v30  ;;  %v261_v40 = vmul.f32 %v213_v38, %v183_v30 }
 0x1e0   :  { %286 = vperm.xlu0 %475, %v251_v31   ;;  %283 = vperm.xlu1 %474, %v250_v32   ;;  %v262_v43 = vmul.f32 %v220_v42, %v183_v30  ;;  %v254_v44 = vmul.f32 %v220_v42, %v182_v27  ;;  %v263_v46 = vmul.f32 %v227_v45, %v183_v30 }
 0x1e1   :  { %v255_v47 = vmul.f32 %v227_v45, %v182_v27  ;;  %v264_v49 = vmul.f32 %v234_v48, %v183_v30  ;;  %v256_v51 = vmul.f32 %v234_v48, %v182_v27  ;;  %v265_v52 = vmul.f32 %v241_v50, %v183_v30 }
 0x1e2   :  { %v257_v53 = vmul.f32 %v241_v50, %v182_v27 }
 0x1e4   :  { %310 = vperm.xlu0 %475, %v259_v33   ;;  %307 = vperm.xlu1 %474, %v258_v34  }
 0x1e8   :  { %313 = vperm.xlu0 %475, %v260_v36   ;;  %289 = vperm.xlu1 %474, %v252_v37  }
 0x1ec   :  { %316 = vperm.xlu0 %475, %v261_v40   ;;  %292 = vperm.xlu1 %474, %v253_v41  }
 0x1f0   :  { %319 = vperm.xlu0 %475, %v262_v43   ;;  %295 = vperm.xlu1 %474, %v254_v44   ;;  %v470_v43 = vld [vmem:[%s648_s4] ss:$0 sm:$0xff] }
 0x1f4   :  { %322 = vperm.xlu0 %475, %v263_v46   ;;  %298 = vperm.xlu1 %474, %v255_v47  }
 0x1f8   :  { %325 = vperm.xlu0 %475, %v264_v49   ;;  %301 = vperm.xlu1 %474, %v256_v51  }
 0x1fc   :  { %328 = vperm.xlu0 %475, %v265_v52   ;;  %304 = vperm.xlu1 %474, %v257_v53  }
 0x25f   :  { %v287_v54 = vpop.permute.xlu0 %286  ;;  %v284_v55 = vpop.permute.xlu1 %283 }
 0x260   :  { %v337_v9 = vrot.slane %v287_v54, %v565_v39  ;;  %v333_v11 = vrot.slane %v284_v55, %v565_v39 }
 0x262   :  { %v394_v22 = vsel %vm140_vm0, %v337_v9, %v333_v11 }
 0x263   :  { %v311_v56 = vpop.permute.xlu0 %310  ;;  %v308_v57 = vpop.permute.xlu1 %307 }
 0x264   :  { %v369_v4 = vrot.slane %v311_v56, %v565_v39  ;;  %v365_v7 = vrot.slane %v308_v57, %v565_v39 }
 0x266   :  { %v405_v18 = vsel %vm140_vm0, %v369_v4, %v365_v7 }
 0x267   :  { %v314_v58 = vpop.permute.xlu0 %313  ;;  %v290_v59 = vpop.permute.xlu1 %289 }
 0x268   :  { %v373_v12 = vrot.slane %v314_v58, %v565_v39  ;;  %v341_v14 = vrot.slane %v290_v59, %v565_v39 }
 0x26a   :  { %v406_v13 = vsel %vm142_vm1, %v373_v12, %v405_v18  ;;  %v395_v25 = vsel %vm142_vm1, %v341_v14, %v394_v22 }
 0x26b   :  { %v317_v60 = vpop.permute.xlu0 %316  ;;  %v293_v61 = vpop.permute.xlu1 %292 }
 0x26c   :  { %v377_v15 = vrot.slane %v317_v60, %v565_v39  ;;  %v345_v16 = vrot.slane %v293_v61, %v565_v39 }
 0x26e   :  { %v407_v6 = vsel %vm144_vm2, %v377_v15, %v406_v13  ;;  %v396_v27 = vsel %vm144_vm2, %v345_v16, %v395_v25 }
 0x26f   :  { %v320_v62 = vpop.permute.xlu0 %319  ;;  %v296_v63 = vpop.permute.xlu1 %295 }
 0x270   :  { %v381_v10 = vrot.slane %v320_v62, %v565_v39  ;;  %v349_v19 = vrot.slane %v296_v63, %v565_v39 }
 0x272   :  { %v408_v28 = vsel %vm397_vm4, %v381_v10, %v407_v6  ;;  %v398_v30 = vsel %vm397_vm4, %v349_v19, %v396_v27 }
 0x273   :  { %v323_v0 = vpop.permute.xlu0 %322  ;;  %v299_v8 = vpop.permute.xlu1 %298 }
 0x274   :  { %v385_v20 = vrot.slane %v323_v0, %v565_v39  ;;  %v353_v23 = vrot.slane %v299_v8, %v565_v39 }
 0x276   :  { %v409_v31 = vsel %vm399_vm5, %v385_v20, %v408_v28  ;;  %v400_v34 = vsel %vm399_vm5, %v353_v23, %v398_v30 }
 0x277   :  { %v326_v17 = vpop.permute.xlu0 %325  ;;  %v302_v21 = vpop.permute.xlu1 %301 }
 0x278   :  { %v389_v24 = vrot.slane %v326_v17, %v565_v39  ;;  %v357_v26 = vrot.slane %v302_v21, %v565_v39 }
 0x27a   :  { %v410_v36 = vsel %vm401_vm6, %v389_v24, %v409_v31  ;;  %v402_v38 = vsel %vm401_vm6, %v357_v26, %v400_v34 }
 0x27b   :  { %v329_v29 = vpop.permute.xlu0 %328  ;;  %v305_v33 = vpop.permute.xlu1 %304 }
 0x27c   :  { %v393_v32 = vrot.slane %v329_v29, %v565_v39  ;;  %v361_v35 = vrot.slane %v305_v33, %v565_v39 }
 0x27e   :  { %v411_v37 = vsel %vm403_vm7, %v393_v32, %v410_v36  ;;  %v404_v41 = vsel %vm403_vm7, %v361_v35, %v402_v38 }
 0x27f   :  { %v418_v40 = vsel %vm414_vm8, %v411_v37, 0.0  ;;  %v415_v42 = vsel %vm414_vm8, %v404_v41, 0.0 }
 0x280   :  { %419 = vadd.xlane.f32.xlu0 %v418_v40  ;;  %416 = vadd.xlane.f32.xlu1 %v415_v42 }
 0x296   :  { %428 = vbcast.lane.b32.xlu0 %v470_v43, 256 }
 0x30d   :  { %v420_v44 = vpop.xlane.xlu0 %419  ;;  %v417_v45 = vpop.xlane.xlu1 %416 }
 0x311   :  { %v429_v46 = vpop.permute.xlu0 %428 }
 0x312   :  { %v431_v47 = vadd.f32 %v429_v46, %v417_v45  ;;  %v432_v48 = vadd.f32 %v429_v46, %v420_v44 }
 0x314   :  { %v471_v49 = vmul.f32 -1.442695, %v431_v47  ;;  %v472_v39 = vmul.f32 -1.442695, %v432_v48 }
 0x316   :  { %484 = vpow2.f32 %v471_v49 }
 0x317   :  { %486 = vpow2.f32 %v472_v39 }
 0x320   :  { %v485_v50 = vpop.eup %484 }
 0x321   :  { %v487_v51 = vpop.eup %486  ;;  %v439_v52 = vadd.f32 1.0, %v485_v50 }
 0x322   :  { %v440_v53 = vadd.f32 1.0, %v487_v51 }
 0x323   :  { %488 = vrcp.f32 %v439_v52 }
 0x324   :  { %490 = vrcp.f32 %v440_v53 }
 0x32d   :  { %v489_v54 = vpop.eup %488 }
 0x32e   :  { %447 = vperm.xlu1 %474, %v489_v54   ;;  %v491_v55 = vpop.eup %490 }
 0x332   :  { %452 = vperm.xlu1 %474, %v491_v55  }
 0x3ad   :  { %v448_v56 = vpop.permute.xlu1 %447 }
 0x3ae   :  { %v455_v57 = vmul.f32 %v448_v56, %v526_v1  ;;  %v456_v58 = vmul.f32 %v448_v56, %v531_v2 }
 0x3b0   :  { %459 = vst [vmem:[%s649_s5] sm:$0xff] %v455_v57  ;;  %460 = vst [vmem:[%s649_s5 + $0x8] sm:$0xff] %v456_v58 }
 0x3b1   :  { %v453_v59 = vpop.permute.xlu1 %452 }
 0x3b2   :  { %v457_v60 = vmul.f32 %v453_v59, %v536_v3  ;;  %v458_v61 = vmul.f32 %v453_v59, %v543_v5 }
 0x3b4   :  { %461 = vst [vmem:[%s649_s5 + $0x10] sm:$0xff] %v457_v60  ;;  %462 = vst [vmem:[%s649_s5 + $0x18] sm:$0xff] %v458_v61 }

</bundles_post_ra>
